<compile_context>
chip_gen: v7x
topology: tpu7x:2x2x1
jax: 0.10.0
libtpu: 0.0.40
codegen_flags: <defaults>
</compile_context>

<pallas_src>
import jax
import jax.numpy as jnp
import numpy as np
from jax import lax
from jax.experimental import pallas as pl
from jax.experimental.pallas import tpu as pltpu

LN_EPS = 1e-12


def _round_up(x, m):
    return ((x + m - 1) // m) * m


def _embeddings_kernel(ids_ref, pos_ref, tab_ref, gamma_ref, beta_ref, out_ref):
    # ids_ref:   (TS, 1) int32   -- token ids for this tile (values in [0, V))
    # pos_ref:   (TS, 1) int32   -- position ids pre-shifted by +V (values in [V, V+S))
    # tab_ref:   (V+S, D) f32    -- concat([word_table, pos_table[:S]]), VMEM resident
    # gamma_ref: (1, D) f32, beta_ref: (1, D) f32
    # out_ref:   (TS, D)
    ts = out_ref.shape[0]
    vt = tab_ref.shape[0]

    # Two-hot selector: one 1 at the word-row column, one 1 at the (shifted) pos-row column.
    col_iota = lax.broadcasted_iota(jnp.int32, (ts, vt), 1)
    sel = jnp.logical_or(col_iota == ids_ref[...],
                         col_iota == pos_ref[...]).astype(jnp.float32)   # (TS, V+S)

    # Fused gather + add on the MXU: (TS, V+S) @ (V+S, D) = word_emb + pos_emb.
    x = jnp.dot(sel, tab_ref[...], preferred_element_type=jnp.float32)   # (TS, D)

    # LayerNorm over the feature (lane) axis, f32 math.
    mean = jnp.mean(x, axis=-1, keepdims=True)
    xc = x - mean
    var = jnp.mean(xc * xc, axis=-1, keepdims=True)
    inv = lax.rsqrt(var + LN_EPS)
    y = xc * inv * gamma_ref[...] + beta_ref[...]

    out_ref[...] = y.astype(out_ref.dtype)


def embeddings_forward(input_ids, word_table, pos_table, gamma, beta):
    """input_ids: (B, S) int; returns (B, S, D) float32."""
    B, S = input_ids.shape
    V, D = word_table.shape
    P, _ = pos_table.shape
    assert S <= P, "sequence length exceeds max_position_embeddings"

    N = B * S
    # Token-tile size (multiple of 8 sublanes); capped to keep the (TS, V+S) selector modest.
    TS = min(256, _round_up(N, 8))
    N_pad = _round_up(N, TS)
    n_tiles = N_pad // TS
    VT = V + S

    # Flattened token-id column and (pre-shifted) position-id column, padded to N_pad.
    ids = input_ids.astype(jnp.int32).reshape(N)
    pos = jnp.tile(jnp.arange(S, dtype=jnp.int32), B) + jnp.int32(V)  # shifted into table rows
    ids_col = jnp.pad(ids, (0, N_pad - N)).reshape(N_pad, 1)
    pos_col = jnp.pad(pos, (0, N_pad - N)).reshape(N_pad, 1)

    # Combined [word_table; pos_table[:S]] slab, f32, VMEM resident inside the kernel.
    table = jnp.concatenate(
        [word_table.astype(jnp.float32), pos_table[:S].astype(jnp.float32)], axis=0)  # (V+S, D)

    gamma2 = gamma.reshape(1, D).astype(jnp.float32)
    beta2 = beta.reshape(1, D).astype(jnp.float32)

    grid_spec = pltpu.PrefetchScalarGridSpec(
        num_scalar_prefetch=0,
        grid=(n_tiles,),
        in_specs=[
            pl.BlockSpec((TS, 1), lambda t: (t, 0)),      # token ids
            pl.BlockSpec((TS, 1), lambda t: (t, 0)),      # shifted position ids
            pl.BlockSpec((VT, D), lambda t: (0, 0)),      # combined table (constant -> DMA'd once)
            pl.BlockSpec((1, D), lambda t: (0, 0)),       # gamma
            pl.BlockSpec((1, D), lambda t: (0, 0)),       # beta
        ],
        out_specs=pl.BlockSpec((TS, D), lambda t: (t, 0)),
    )

    # Raise the scoped VMEM limit only if the resident table + selector + tiles need it.
    tile_bytes = TS * D * 4
    est_vmem = 2 * VT * D * 4 + 2 * TS * VT * 4 + 8 * tile_bytes + (1 << 20)
    compiler_kwargs = dict(dimension_semantics=("parallel",))
    if est_vmem > 16 * (1 << 20):
        compiler_kwargs["vmem_limit_bytes"] = min(int(est_vmem * 3 // 2), 60 * (1 << 20))

    out = pl.pallas_call(
        _embeddings_kernel,
        out_shape=jax.ShapeDtypeStruct((N_pad, D), jnp.float32),
        grid_spec=grid_spec,
        compiler_params=pltpu.CompilerParams(**compiler_kwargs),
    )(ids_col, pos_col, table, gamma2, beta2)

    return out[:N].reshape(B, S, D)


def embeddings_reference(input_ids, word_table, pos_table, gamma, beta):
    B, S = input_ids.shape
    we = word_table[input_ids]                       # (B, S, D)
    pe = pos_table[jnp.arange(S)][None, :, :]        # (1, S, D)
    x = we + pe
    mean = jnp.mean(x, axis=-1, keepdims=True)
    var = jnp.mean((x - mean) ** 2, axis=-1, keepdims=True)
    y = (x - mean) / jnp.sqrt(var + LN_EPS)
    return y * gamma + beta


if __name__ == "__main__":
    # Small, module-consistent shapes
    vocab_size = 64
    embedding_dim = 32
    pad_token_id = 0
    max_position_embeddings = 16
    batch = 2
    seq = 8

    key = jax.random.PRNGKey(0)
    k_ids, k_word, k_pos = jax.random.split(key, 3)

    # Deterministic parameter init (synthetic; pad row zeroed like nn.Embedding padding_idx)
    word_table = 0.02 * jax.random.normal(k_word, (vocab_size, embedding_dim), jnp.float32)
    word_table = word_table.at[pad_token_id].set(0.0)
    pos_table = 0.02 * jax.random.normal(
        k_pos, (max_position_embeddings, embedding_dim), jnp.float32)
    gamma = jnp.ones((embedding_dim,), jnp.float32)
    beta = jnp.zeros((embedding_dim,), jnp.float32)

    input_ids = jax.random.randint(k_ids, (batch, seq), 0, vocab_size, dtype=jnp.int32)

    out = embeddings_forward(input_ids, word_table, pos_table, gamma, beta)
    out = jax.block_until_ready(out)

    ref = embeddings_reference(input_ids, word_table, pos_table, gamma, beta)
    np.testing.assert_allclose(np.asarray(out), np.asarray(ref), rtol=1e-5, atol=1e-5)

    print("KERNEL_OK")
</pallas_src>

<mosaic_0001>
module attributes {stable_mosaic.version = 11 : i64} {
  func.func @_embeddings_kernel(%arg0: i32, %arg1: memref<16x1xi32, #tpu.memory_space<vmem>>, %arg2: memref<16x1xi32, #tpu.memory_space<vmem>>, %arg3: memref<72x32xf32, #tpu.memory_space<vmem>>, %arg4: memref<1x32xf32, #tpu.memory_space<vmem>>, %arg5: memref<1x32xf32, #tpu.memory_space<vmem>>, %arg6: memref<16x32xf32, #tpu.memory_space<vmem>>) attributes {dimension_semantics = [#tpu.dimension_semantics<parallel>], iteration_bounds = array<i64: 1>, scalar_prefetch = 0 : i64, scratch_operands = 0 : i64, tpu.core_type = #tpu.core_type<tc>, window_params = [{transform_indices = @transform_0, window_bounds = array<i64: 16, 1>}, {transform_indices = @transform_1, window_bounds = array<i64: 16, 1>}, {pipeline_mode = #tpu.pipeline_mode<synchronous>, transform_indices = @transform_2, window_bounds = array<i64: 72, 32>}, {pipeline_mode = #tpu.pipeline_mode<synchronous>, transform_indices = @transform_3, window_bounds = array<i64: 1, 32>}, {pipeline_mode = #tpu.pipeline_mode<synchronous>, transform_indices = @transform_4, window_bounds = array<i64: 1, 32>}, {transform_indices = @transform_5, window_bounds = array<i64: 16, 32>}]} {
    %0 = tpu.iota {dimensions = array<i32: 1>} : vector<16x72xi32>
    %c0 = arith.constant 0 : index
    %c0_0 = arith.constant 0 : index
    %1 = vector.load %arg1[%c0, %c0_0] : memref<16x1xi32, #tpu.memory_space<vmem>>, vector<16x1xi32>
    %2 = vector.broadcast %1 : vector<16x1xi32> to vector<16x72xi32>
    %3 = arith.cmpi eq, %0, %2 : vector<16x72xi32>
    %c0_1 = arith.constant 0 : index
    %c0_2 = arith.constant 0 : index
    %4 = vector.load %arg2[%c0_1, %c0_2] : memref<16x1xi32, #tpu.memory_space<vmem>>, vector<16x1xi32>
    %5 = vector.broadcast %4 : vector<16x1xi32> to vector<16x72xi32>
    %6 = arith.cmpi eq, %0, %5 : vector<16x72xi32>
    %7 = arith.ori %3, %6 : vector<16x72xi1>
    %8 = arith.extui %7 : vector<16x72xi1> to vector<16x72xi32>
    %9 = arith.sitofp %8 : vector<16x72xi32> to vector<16x72xf32>
    %c0_3 = arith.constant 0 : index
    %c0_4 = arith.constant 0 : index
    %10 = vector.load %arg3[%c0_3, %c0_4] : memref<72x32xf32, #tpu.memory_space<vmem>>, vector<72x32xf32>
    %cst = arith.constant dense<0.000000e+00> : vector<16x32xf32>
    %11 = tpu.matmul %9, %10, %cst {dimension_numbers = #tpu.dot_dimension_numbers<[1], [0], [0], [1], [0, 0, 1, 1], [], []>} : vector<16x72xf32>, vector<72x32xf32>, vector<16x32xf32> -> vector<16x32xf32>
    %cst_5 = arith.constant dense<0.000000e+00> : vector<16xf32>
    %12 = vector.multi_reduction <add>, %11, %cst_5 [1] : vector<16x32xf32> to vector<16xf32>
    %13 = vector.shape_cast %12 : vector<16xf32> to vector<16x1xf32>
    %cst_6 = arith.constant 3.200000e+01 : f32
    %14 = vector.broadcast %cst_6 : f32 to vector<16x1xf32>
    %15 = arith.divf %13, %14 : vector<16x1xf32>
    %16 = vector.broadcast %15 : vector<16x1xf32> to vector<16x32xf32>
    %17 = arith.subf %11, %16 : vector<16x32xf32>
    %18 = arith.mulf %17, %17 : vector<16x32xf32>
    %cst_7 = arith.constant dense<0.000000e+00> : vector<16xf32>
    %19 = vector.multi_reduction <add>, %18, %cst_7 [1] : vector<16x32xf32> to vector<16xf32>
    %20 = vector.shape_cast %19 : vector<16xf32> to vector<16x1xf32>
    %cst_8 = arith.constant 3.200000e+01 : f32
    %21 = vector.broadcast %cst_8 : f32 to vector<16x1xf32>
    %22 = arith.divf %20, %21 : vector<16x1xf32>
    %cst_9 = arith.constant 9.99999996E-13 : f32
    %23 = vector.broadcast %cst_9 : f32 to vector<16x1xf32>
    %24 = arith.addf %22, %23 : vector<16x1xf32>
    %25 = math.rsqrt %24 : vector<16x1xf32>
    %26 = vector.broadcast %25 : vector<16x1xf32> to vector<16x32xf32>
    %27 = arith.mulf %17, %26 : vector<16x32xf32>
    %c0_10 = arith.constant 0 : index
    %c0_11 = arith.constant 0 : index
    %28 = vector.load %arg4[%c0_10, %c0_11] : memref<1x32xf32, #tpu.memory_space<vmem>>, vector<1x32xf32>
    %29 = vector.broadcast %28 : vector<1x32xf32> to vector<16x32xf32>
    %30 = arith.mulf %27, %29 : vector<16x32xf32>
    %c0_12 = arith.constant 0 : index
    %c0_13 = arith.constant 0 : index
    %31 = vector.load %arg5[%c0_12, %c0_13] : memref<1x32xf32, #tpu.memory_space<vmem>>, vector<1x32xf32>
    %32 = vector.broadcast %31 : vector<1x32xf32> to vector<16x32xf32>
    %33 = arith.addf %30, %32 : vector<16x32xf32>
    %c0_14 = arith.constant 0 : index
    %c0_15 = arith.constant 0 : index
    %34 = vector.load %arg6[%c0_14, %c0_15] : memref<16x32xf32, #tpu.memory_space<vmem>>, vector<16x32xf32>
    tpu.vector_store %arg6[%c0_14, %c0_15], %33 {strides = array<i32>} : memref<16x32xf32, #tpu.memory_space<vmem>>, vector<16x32xf32>,
    return
  }
  func.func @transform_0(%arg0: i32) -> (i32, i32) {
    %c0_i32 = arith.constant 0 : i32
    %c0_i32_0 = arith.constant 0 : i32
    return %arg0, %c0_i32 : i32, i32
  }
  func.func @transform_1(%arg0: i32) -> (i32, i32) {
    %c0_i32 = arith.constant 0 : i32
    %c0_i32_0 = arith.constant 0 : i32
    return %arg0, %c0_i32 : i32, i32
  }
  func.func @transform_2(%arg0: i32) -> (i32, i32) {
    %c0_i32 = arith.constant 0 : i32
    %c0_i32_0 = arith.constant 0 : i32
    %c0_i32_1 = arith.constant 0 : i32
    return %c0_i32, %c0_i32_0 : i32, i32
  }
  func.func @transform_3(%arg0: i32) -> (i32, i32) {
    %c0_i32 = arith.constant 0 : i32
    %c0_i32_0 = arith.constant 0 : i32
    %c0_i32_1 = arith.constant 0 : i32
    return %c0_i32, %c0_i32_0 : i32, i32
  }
  func.func @transform_4(%arg0: i32) -> (i32, i32) {
    %c0_i32 = arith.constant 0 : i32
    %c0_i32_0 = arith.constant 0 : i32
    %c0_i32_1 = arith.constant 0 : i32
    return %c0_i32, %c0_i32_0 : i32, i32
  }
  func.func @transform_5(%arg0: i32) -> (i32, i32) {
    %c0_i32 = arith.constant 0 : i32
    %c0_i32_0 = arith.constant 0 : i32
    return %arg0, %c0_i32 : i32, i32
  }
}

</mosaic_0001>

<bundles_post_ra>
// kernel: tpu_custom_call.1
= control target key start
LH: loop header
LB: loop body
LE: loop exit
PB: predicated region body
PF: predicated region fallthrough
CT: control target
= control target key end

     0   :  { %v293_v2 = vmov 0   ;;  %s391_s0 = inlined_call_operand.vmem [shape: s32[16,1], index: 0, kind: input, shape index: {}]   ;;  %s392_s1 = inlined_call_operand.vmem [shape: s32[16,1], index: 1, kind: input, shape index: {}]   ;;  %s393_s2 = inlined_call_operand.vmem [shape: f32[72,32], index: 2, kind: input, shape index: {}]   ;;  %s394_s3 = inlined_call_operand.vmem [shape: f32[1,32], index: 3, kind: input, shape index: {}]   ;;  %s395_s4 = inlined_call_operand.vmem [shape: f32[1,32], index: 4, kind: input, shape index: {}]   ;;  %s396_s5 = inlined_call_operand.hbm [shape: f32[16,32], index: 5, kind: output, shape index: {}]  }
   0x1   :  { %v24_v0 = vld [vmem:[%s391_s0 + $0x8] sm:$0xff]  ;;  %v23_v1 = vld [vmem:[%s391_s0] sm:$0xff]  ;;  %264 = vset.pattern.permute.xlu1 %v293_v2  ;;  %263 = vset.pattern.permute.xlu0 %v293_v2  ;;  %v51_v7 = vld [vmem:[%s393_s2 + $0x10] sm:$0xff] }
   0x2   :  { %v49_v3 = vld [vmem:[%s393_s2] sm:$0xff]  ;;  %v50_v4 = vld [vmem:[%s393_s2 + $0x8] sm:$0xff]  ;;  %29 = vperm.xlu1 %264, %v24_v0   ;;  %26 = vperm.xlu0 %263, %v23_v1   ;;  %v52_v8 = vld [vmem:[%s393_s2 + $0x18] sm:$0xff] }
   0x3   :  { %v34_v5 = vld [vmem:[%s392_s1 + $0x8] sm:$0xff]  ;;  %v242_v6 = vpack.c.bf16 %v50_v4, %v49_v3  ;;  %v33_v9 = vld [vmem:[%s392_s1] sm:$0xff]  ;;  %v246_v10 = vpack.c.bf16 %v52_v8, %v51_v7 }
   0x4   :  { %v53_v11 = vld [vmem:[%s393_s2 + $0x20] sm:$0xff]  ;;  %v54_v12 = vld [vmem:[%s393_s2 + $0x28] sm:$0xff] }
   0x5   :  { %243 = vmatprep.subr.bf16.mxu0 %v242_v6 }
   0x6   :  { %10 = vsyncpa [#allocation3], 0  ;;  %245 = vmatpush3.bf16.msra.mxu0 %v242_v6  ;;  %39 = vperm.xlu1 %264, %v34_v5   ;;  %v250_v13 = vpack.c.bf16 %v54_v12, %v53_v11  ;;  %v55_v14 = vld [vmem:[%s393_s2 + $0x30] sm:$0xff]  ;;  %v56_v15 = vld [vmem:[%s393_s2 + $0x38] sm:$0xff]  ;;  %v21_v18 = vlaneseq  ;;  %vm58_vm5 = vcmask 588800   ;;  %v294_v24 = vmov 0.0  }
   0x7   :  { %36 = vperm.xlu0 %263, %v33_v9   ;;  %247 = vmatprep.subr.bf16.mxu0 %v246_v10  ;;  %v254_v16 = vpack.c.bf16 %v56_v15, %v55_v14  ;;  %v57_v17 = vld [vmem:[%s393_s2 + $0x40] sm:$0xff]  ;;  %vm140_vm7 = vcmask 261120   ;;  %s295_s20 = smov [#allocation2]  }
   0x8   :  { %v22_v21 = vand.u32 127, %v21_v18  ;;  %v208_v48 = vld [vmem:[%s394_s3] ss:$0 sm:$0xff]  ;;  %s193_s21 = sshll.u32 %s295_s20, 4  ;;  %s194_s21 = int_to_ptr.vmem [resolvable:$true] %s193_s21 }
   0x9   :  { %v209_v50 = vld [vmem:[%s395_s4] ss:$0 sm:$0xff]  ;;  %s269_s22 = scalar_lea.vmem %s194_s21, 256  ;;  %p274_p1 = scmp.lt.s32.totalorder %s194_s21, %s194_s21 }
   0xa   :  { %249 = vmatpush3.bf16.msra.mxu0 %v246_v10  ;;  %p270_p0 = scmp.ne.s32.totalorder %s194_s21, %s269_s22  ;;  %p275_p2 = scmp.lt.s32.totalorder %s269_s22, %s269_s22 }
   0xb   :  { %251 = vmatprep.subr.bf16.mxu0 %v250_v13 }
   0xc   :  { %p276_p3 = por %p275_p2, %p274_p1 }
   0xe   :  { %253 = vmatpush3.bf16.msra.mxu0 %v250_v13  ;;  %p277_p4 = pnand %p276_p3, %p270_p0 }
   0xf   :  { %255 = vmatprep.subr.bf16.mxu0 %v254_v16 }
  0x12   :  { %257 = vmatpush3.bf16.msra.mxu0 %v254_v16 }
  0x13   :  { %237 = vmatprep.subr.mxu0 %v57_v17 }
  0x16   :  { %238 = vmatpush3.msra.mxu0 %v57_v17 }
  0x81   :  { %v30_v19 = vpop.permute.xlu1 %29  ;;  %v27_v20 = vpop.permute.xlu0 %26 }
  0x82   :  { %vm32_vm0 = vcmp.eq.s32.totalorder %v22_v21, %v30_v19  ;;  %vm31_vm3 = vcmp.eq.s32.totalorder %v22_v21, %v27_v20 }
  0x85   :  { %v40_v22 = vpop.permute.xlu1 %39 }
  0x86   :  { %v37_v23 = vpop.permute.xlu0 %36  ;;  %vm42_vm1 = vcmp.eq.s32.totalorder %v22_v21, %v40_v22 }
  0x87   :  { %vm41_vm2 = vcmp.eq.s32.totalorder %v22_v21, %v37_v23  ;;  %vm44_vm4 = vmor %vm32_vm0, %vm42_vm1 }
  0x88   :  { %vm43_vm6 = vmor %vm31_vm3, %vm41_vm2  ;;  %v205_v25 = vsel %vm44_vm4, 1.0, %v294_v24 }
  0x89   :  { %v204_v26 = vsel %vm43_vm6, 1.0, %v294_v24 }
  0x8a   :  { %239 = vmatprep.mubr.msk.f32.mxu0 %vm58_vm5, %v204_v26 }
  0x8b   :  { %240 = vmatmul.mubr.msk.f32.vlgmr.msra.gmra.mrb[0].mxu0 %vm58_vm5, %v205_v25 }
 0x15e   :  { %v241_v27 = vpop.f32.mrb[0].mxu0 }
 0x15f   :  { %v131_v28 = vpop.f32.mrb[1].mxu0  ;;  %v144_v29 = vsel %vm140_vm7, %v241_v27, 0.0 }
 0x160   :  { %145 = vadd.xlane.f32.xlu1 %v144_v29  ;;  %v141_v30 = vsel %vm140_vm7, %v131_v28, 0.0 }
 0x161   :  { %142 = vadd.xlane.f32.xlu0 %v141_v30 }
 0x1ed   :  { %v146_v31 = vpop.xlane.xlu1 %145 }
 0x1ee   :  { %v149_v32 = vmul.f32 0.03125, %v146_v31  ;;  %v143_v33 = vpop.xlane.xlu0 %142 }
 0x1ef   :  { %v148_v34 = vmul.f32 0.03125, %v143_v33 }
 0x1f0   :  { %v151_v35 = vsub.f32 %v241_v27, %v149_v32 }
 0x1f1   :  { %v150_v36 = vsub.f32 %v131_v28, %v148_v34 }
 0x1f2   :  { %v153_v39 = vmul.f32 %v151_v35, %v151_v35 }
 0x1f3   :  { %v152_v37 = vmul.f32 %v150_v36, %v150_v36 }
 0x1f4   :  { %v157_v40 = vsel %vm140_vm7, %v153_v39, 0.0 }
 0x1f5   :  { %v154_v38 = vsel %vm140_vm7, %v152_v37, 0.0 }
 0x1f6   :  { %155 = vadd.xlane.f32.xlu0 %v154_v38 }
 0x1fa   :  { %158 = vadd.xlane.f32.xlu0 %v157_v40 }
 0x283   :  { %v156_v41 = vpop.xlane.xlu0 %155 }
 0x284   :  { %v160_v42 = vmul.f32 0.03125, %v156_v41 }
 0x286   :  { %v162_v43 = vadd.f32 1e-12, %v160_v42 }
 0x287   :  { %v159_v44 = vpop.xlane.xlu0 %158 }
 0x288   :  { %265 = vrsqrt.f32 %v162_v43  ;;  %v161_v45 = vmul.f32 0.03125, %v159_v44 }
 0x28a   :  { %v163_v46 = vadd.f32 1e-12, %v161_v45 }
 0x28c   :  { %267 = vrsqrt.f32 %v163_v46 }
 0x292   :  { %v266_v47 = vpop.eup %265 }
 0x293   :  { %v166_v49 = vmul.f32 %v266_v47, %v150_v36 }
 0x295   :  { %v175_v51 = vmul.f32 %v208_v48, %v166_v49 }
 0x296   :  { %v268_v52 = vpop.eup %267 }
 0x297   :  { %v167_v53 = vmul.f32 %v268_v52, %v151_v35  ;;  %v184_v54 = vadd.f32 %v209_v50, %v175_v51 }
 0x299   :  { %v176_v55 = vmul.f32 %v208_v48, %v167_v53  ;;  %186 = vst.msk [vmem:[#allocation2] sm:$0xff] %vm140_vm7, %v184_v54 }
 0x29b   :  { %v185_v56 = vadd.f32 %v209_v50, %v176_v55 }
 0x29d   :  { %187 = vst.msk [vmem:[#allocation2 + $0x8] sm:$0xff] %vm140_vm7, %v185_v56 }
 0x29e   :  { %280 = shalt.err (!%p277_p4)
}
 0x29f   :  { %s281_s23 = scalar_lea.hbm %s396_s5, 256 }
 0x2a0   :  { %p282_p5 = scmp.ne.s32.totalorder %s396_s5, %s281_s23  ;;  %p285_p6 = scmp.lt.u32.totalorder %s281_s23, %s396_s5 }
 0x2a2   :  { %p287_p7 = pnand %p285_p6, %p282_p5 }
 0x2a4   :  { %290 = shalt.err (!%p287_p7)
}
 0x2a5   :  { %s296_s28 = smov 128   ;;  %s297_s0 = smov 8  }
 0x2a6   :  { %199 = dma.vmem_to_hbm [thread:$0]  %s194_s21, 256, %s396_s5, [#allocation3], %s296_s28, %s296_s28, %s297_s0  }
 0x2a7   :  { %291 = dma.done.wait [#allocation3], 256  }
 0x2a8   :  { %292 = vsyncadd [#allocation3], 4294967040 }
 0x2a9   :  { %203 = vsyncpa [#allocation3], 1 }

</bundles_post_ra>
